<compile_context>
chip_gen: v5e
topology: v5e:2x2
jax: 0.10.0
libtpu: 0.0.40
codegen_flags: <defaults>
</compile_context>

<pallas_src>
import jax
import jax.numpy as jnp
from jax.experimental import pallas as pl
from jax.experimental.pallas import tpu as pltpu

# Sublane rows of the resident (8, 128) accumulator tile.
_ROW_CE, _ROW_U, _ROW_V, _ROW_KP, _ROW_TR = 0, 1, 2, 3, 4


def _fold_lanes(x):
    """Reduce a (TB, R, L) f32 tile to a (1, 128) per-lane partial sum.

    When L is a multiple of 128 the lane axis is folded with pure VPU adds
    (static 128-wide slices select whole vregs); only the cheap sublane /
    leading axes are reduced in-kernel and the expensive cross-lane
    reduction is deferred to the JAX wrapper.  Otherwise fall back to a
    scalar sum scattered onto lane 0.
    """
    tb, r, l = x.shape
    if l % 128 == 0:
        acc = x[:, :, 0:128]
        for k in range(1, l // 128):
            acc = acc + x[:, :, k * 128:(k + 1) * 128]
        return jnp.sum(acc, axis=(0, 1), keepdims=True)[0]       # (1, 128)
    s = jnp.sum(x)
    lane = jax.lax.broadcasted_iota(jnp.int32, (1, 128), 1)
    return jnp.where(lane == 0, s, 0.0)


def _loss_kernel(logits_ref, labels_ref, u_p_ref, u_t_ref, v_p_ref, v_t_ref,
                 kp_p_ref, kp_t_ref, bb_p_ref, tch_ref, out_ref):
    """Accumulates per-lane loss partial sums into the resident out tile."""
    s = pl.program_id(0)
    j = pl.program_id(1)
    h = pl.program_id(2)
    first = (j == 0) & (h == 0)

    @pl.when(first)
    def _init():
        out_ref[...] = jnp.zeros_like(out_ref)

    # ---- Cross entropy: class axis on sublanes, spatial on lanes ----
    logits = logits_ref[...].astype(jnp.float32)             # (TB, C, HWT)
    labels = labels_ref[...]                                  # (TB, 1, HWT)
    m = jnp.max(logits, axis=1, keepdims=True)                # (TB, 1, HWT)
    shifted = logits - m
    sumexp = jnp.sum(jnp.exp(shifted), axis=1, keepdims=True)
    cls = jax.lax.broadcasted_iota(jnp.int32, shifted.shape, 1)
    # Fused one-hot gather while the shifted logits are live (single pass).
    picked = jnp.sum(jnp.where(cls == labels, shifted, 0.0), axis=1,
                     keepdims=True)
    ce_px = jnp.log(sumexp) - picked                          # (TB, 1, HWT)
    ce_lane = _fold_lanes(ce_px)                              # (1, 128)

    # ---- Smooth L1 (beta = 1.0), per-lane partial sums ----
    def sl1_lane(p_ref, t_ref):
        d = p_ref[...].astype(jnp.float32) - t_ref[...].astype(jnp.float32)
        ad = jnp.abs(d)
        return _fold_lanes(jnp.where(ad < 1.0, 0.5 * d * d, ad - 0.5))

    u_lane = sl1_lane(u_p_ref, u_t_ref)
    v_lane = sl1_lane(v_p_ref, v_t_ref)

    # Accumulate into dedicated sublane rows of the one-vreg output tile.
    sub = jax.lax.broadcasted_iota(jnp.int32, (8, 128), 0)
    upd = (jnp.where(sub == _ROW_CE, ce_lane, 0.0)
           + jnp.where(sub == _ROW_U, u_lane, 0.0)
           + jnp.where(sub == _ROW_V, v_lane, 0.0))
    out_ref[0] = out_ref[0] + upd

    # ---- Tiny keypoint / teacher MSE streams: resident full-batch blocks,
    # evaluated once per kernel invocation (not per step). ----
    @pl.when(first & (s == 0))
    def _aux():
        def mse_sum(p_ref, t_ref):
            d = p_ref[...].astype(jnp.float32) - t_ref[...].astype(jnp.float32)
            return jnp.sum(d * d)
        kp_sum = mse_sum(kp_p_ref, kp_t_ref)
        tr_sum = mse_sum(bb_p_ref, tch_ref)
        sub2 = jax.lax.broadcasted_iota(jnp.int32, (8, 128), 0)
        lane2 = jax.lax.broadcasted_iota(jnp.int32, (8, 128), 1)
        aux = (jnp.where((sub2 == _ROW_KP) & (lane2 == 0), kp_sum, 0.0)
               + jnp.where((sub2 == _ROW_TR) & (lane2 == 0), tr_sum, 0.0))
        out_ref[0] = out_ref[0] + aux


def _vmem_capacity_bytes():
    try:
        return int(pltpu.get_tpu_info().vmem_capacity_bytes)
    except Exception:
        return 64 << 20          # conservative: v7x per-TensorCore VMEM


def _num_tensorcores():
    # v7x (and megacore v4 / v5p) expose 2 TensorCores to grid "parallel"
    # sharding; v5e / v6e are single-core.
    try:
        kind = jax.devices()[0].device_kind.lower()
    except Exception:
        return 1
    if ("v7" in kind) or ("v4" in kind) or ("v5p" in kind):
        return 2
    return 1


def _largest_divisor_leq(n, cap):
    cap = int(max(1, min(n, cap)))
    for d in range(cap, 0, -1):
        if n % d == 0:
            return d
    return 1


def _largest_mult128_divisor_leq(n, cap):
    best = None
    d = 128
    lim = int(min(n, cap))
    while d <= lim:
        if n % d == 0:
            best = d
        d += 128
    return best


def wifi_densepose_loss(predictions, targets, teacher_features,
                        lambda_dp=0.6, lambda_kp=0.3, lambda_tr=0.1):
    """Pallas implementation of WiFiDensePoseLoss.forward (all branches taken)."""
    # TODO(synk): optional-branch handling ('densepose'/'keypoints'/teacher
    # missing) is resolved statically in the wrapper, not inside the kernel.
    part_logits = predictions['densepose']['part_logits']     # (B, C, H, W)
    part_labels = targets['densepose']['part_labels']         # (B, H, W)
    B, C, H, W = part_logits.shape
    HW = H * W

    # Contiguity-preserving reshapes only (no transposes, no extra HBM pass).
    logits = part_logits.reshape(B, C, HW)
    labels = part_labels.reshape(B, 1, HW).astype(jnp.int32)
    u_p = predictions['densepose']['u_coords'].reshape(B, C, HW)
    u_t = targets['densepose']['u_coords'].reshape(B, C, HW)
    v_p = predictions['densepose']['v_coords'].reshape(B, C, HW)
    v_t = targets['densepose']['v_coords'].reshape(B, C, HW)
    kp_p = predictions['keypoints'].reshape(B, -1)
    kp_t = targets['keypoints'].reshape(B, -1)
    bb_p = predictions['backbone_features'].reshape(B, -1)
    tch = teacher_features.reshape(B, -1)

    # ---- Megacore split (multi-TensorCore chips only). ----
    cores = _num_tensorcores()
    n_split = cores if (cores > 1 and B >= cores and B % cores == 0) else 1
    # TODO(synk): odd B on 2-core chips falls back to a single stream (one
    # core idle) rather than batch padding, since padded elements are not
    # loss-neutral for the cross entropy.
    bp = B // n_split

    # ---- Block sizing: several batch elements per step, ~8 MiB
    # double-buffered working set for the pipelined streams (fits v5e's
    # default scoped VMEM and well inside v7x's 64 MiB). ----
    big_inputs = (logits, labels, u_p, u_t, v_p, v_t)
    per_hw_bytes = sum(x.shape[1] * x.dtype.itemsize for x in big_inputs)
    elem_bytes = per_hw_bytes * HW
    blk_budget = (8 << 20) // 2                 # per in-flight block set

    if elem_bytes <= blk_budget:
        hw_t = HW
        tb = _largest_divisor_leq(bp, blk_budget // max(1, elem_bytes))
    else:
        # A single batch element is already too big: tile the spatial axis
        # instead (CE / Smooth-L1 are independent per spatial position).
        tb = 1
        hw_t = _largest_mult128_divisor_leq(HW, blk_budget // per_hw_bytes)
        if hw_t is None:
            # TODO(synk): no 128-multiple divisor of HW; may exceed the VMEM
            # budget on v7x for extreme shapes.
            hw_t = HW
    steps_b = bp // tb
    steps_hw = HW // hw_t
    grid = (n_split, steps_b, steps_hw)

    def big_map(s, j, h):
        return (s * steps_b + j, 0, h)

    def small_map(s, j, h):
        return (0, 0)

    in_specs = [
        pl.BlockSpec((tb, C, hw_t), big_map),     # part logits
        pl.BlockSpec((tb, 1, hw_t), big_map),     # part labels
        pl.BlockSpec((tb, C, hw_t), big_map),     # u pred
        pl.BlockSpec((tb, C, hw_t), big_map),     # u target
        pl.BlockSpec((tb, C, hw_t), big_map),     # v pred
        pl.BlockSpec((tb, C, hw_t), big_map),     # v target
        # Tiny streams: resident full-batch blocks (constant index map ->
        # fetched once, not re-DMA'd every step).
        pl.BlockSpec(kp_p.shape, small_map),
        pl.BlockSpec(kp_t.shape, small_map),
        pl.BlockSpec(bb_p.shape, small_map),
        pl.BlockSpec(tch.shape, small_map),
    ]
    out_specs = pl.BlockSpec((1, 8, 128), lambda s, j, h: (s, 0, 0))
    out_shape = jax.ShapeDtypeStruct((n_split, 8, 128), jnp.float32)

    inputs = (logits, labels, u_p, u_t, v_p, v_t, kp_p, kp_t, bb_p, tch)

    # ---- VMEM budget: double-buffered pipelined blocks + resident tiny
    # blocks + headroom, capped below the chip's physical VMEM. ----
    block_bytes = tb * hw_t * per_hw_bytes
    resident_bytes = 2 * sum(x.size * x.dtype.itemsize
                             for x in (kp_p, kp_t, bb_p, tch))
    out_bytes = n_split * 8 * 128 * 4
    vmem_cap = _vmem_capacity_bytes()
    vmem_limit = int(min(max(2 * block_bytes + resident_bytes + out_bytes
                             + (8 << 20), 32 << 20),
                         vmem_cap - (8 << 20)))

    total_in_bytes = sum(x.size * x.dtype.itemsize for x in inputs)
    cost = pl.CostEstimate(
        flops=int(10 * logits.size + 8 * (u_p.size + v_p.size)
                  + 4 * (kp_p.size + bb_p.size)),
        transcendentals=int(logits.size + B * HW),
        bytes_accessed=int(total_in_bytes + out_bytes),
    )

    # TODO(synk): if profiling still shows exposed DMA for very large HW,
    # sweep pipeline_mode=pl.Buffered(3) on the big slabs (VMEM-gated on v7x).
    partials = pl.pallas_call(
        _loss_kernel,
        out_shape=out_shape,
        grid=grid,
        in_specs=in_specs,
        out_specs=out_specs,
        compiler_params=pltpu.CompilerParams(
            dimension_semantics=("parallel", "arbitrary", "arbitrary"),
            vmem_limit_bytes=vmem_limit,
        ),
        cost_estimate=cost,
    )(*inputs)

    # Final cross-lane / cross-split reduction + per-branch means + weighted
    # combine: a handful of scalar XLA ops.
    sums = jnp.sum(partials, axis=(0, 2))            # (8,)
    ce = sums[_ROW_CE] / (B * HW)
    u_mean = sums[_ROW_U] / u_p.size
    v_mean = sums[_ROW_V] / v_p.size
    kp_loss = sums[_ROW_KP] / kp_p.size
    tr_loss = sums[_ROW_TR] / bb_p.size
    dp_loss = ce + 0.5 * (u_mean + v_mean)
    total = lambda_dp * dp_loss + lambda_kp * kp_loss + lambda_tr * tr_loss
    loss_dict = {
        'densepose': dp_loss,
        'keypoint': kp_loss,
        'transfer': tr_loss,
        'total': total,
    }
    return total, loss_dict


def _reference(predictions, targets, teacher_features,
               lambda_dp=0.6, lambda_kp=0.3, lambda_tr=0.1):
    """Pure-JAX reference for validation."""
    logits = predictions['densepose']['part_logits'].astype(jnp.float32)
    labels = targets['densepose']['part_labels']
    logp = jax.nn.log_softmax(logits, axis=1)                    # (B,C,H,W)
    picked = jnp.take_along_axis(logp, labels[:, None, :, :], axis=1)
    ce = -jnp.mean(picked)

    def sl1(p, t):
        d = p - t
        ad = jnp.abs(d)
        return jnp.mean(jnp.where(ad < 1.0, 0.5 * d * d, ad - 0.5))

    uv = (sl1(predictions['densepose']['u_coords'], targets['densepose']['u_coords']) +
          sl1(predictions['densepose']['v_coords'], targets['densepose']['v_coords'])) / 2
    dp = ce + uv
    kp = jnp.mean((predictions['keypoints'] - targets['keypoints']) ** 2)
    tr = jnp.mean((predictions['backbone_features'] - teacher_features) ** 2)
    total = lambda_dp * dp + lambda_kp * kp + lambda_tr * tr
    return total, {'densepose': dp, 'keypoint': kp, 'transfer': tr, 'total': total}


if __name__ == "__main__":
    key = jax.random.PRNGKey(0)
    ks = jax.random.split(key, 10)

    B, C, H, W = 2, 8, 16, 16           # part classes / spatial grid
    K = 17                               # keypoints (x, y, conf)
    FB, FH, FW = 32, 8, 8                # backbone feature map

    predictions = {
        'densepose': {
            'part_logits': jax.random.normal(ks[0], (B, C, H, W), jnp.float32),
            'u_coords': jax.random.normal(ks[1], (B, C, H, W), jnp.float32),
            'v_coords': jax.random.normal(ks[2], (B, C, H, W), jnp.float32),
        },
        'keypoints': jax.random.normal(ks[3], (B, K, 3), jnp.float32),
        'backbone_features': jax.random.normal(ks[4], (B, FB, FH, FW), jnp.float32),
    }
    targets = {
        'densepose': {
            'part_labels': jax.random.randint(ks[5], (B, H, W), 0, C, jnp.int32),
            'u_coords': jax.random.normal(ks[6], (B, C, H, W), jnp.float32),
            'v_coords': jax.random.normal(ks[7], (B, C, H, W), jnp.float32),
        },
        'keypoints': jax.random.normal(ks[8], (B, K, 3), jnp.float32),
    }
    teacher_features = jax.random.normal(ks[9], (B, FB, FH, FW), jnp.float32)

    total_loss, loss_dict = wifi_densepose_loss(predictions, targets, teacher_features)
    total_loss = jax.block_until_ready(total_loss)

    ref_total, ref_dict = _reference(predictions, targets, teacher_features)
    ref_total = jax.block_until_ready(ref_total)

    assert jnp.allclose(total_loss, ref_total, rtol=1e-5, atol=1e-5), (total_loss, ref_total)
    for k in ('densepose', 'keypoint', 'transfer', 'total'):
        assert jnp.allclose(loss_dict[k], ref_dict[k], rtol=1e-5, atol=1e-5), (
            k, loss_dict[k], ref_dict[k])

    print("KERNEL_OK")
</pallas_src>

<mosaic_0001>
module attributes {stable_mosaic.version = 11 : i64} {
  func.func @_loss_kernel(%arg0: i32, %arg1: i32, %arg2: i32, %arg3: memref<2x8x256xf32, #tpu.memory_space<vmem>>, %arg4: memref<2x1x256xi32, #tpu.memory_space<vmem>>, %arg5: memref<2x8x256xf32, #tpu.memory_space<vmem>>, %arg6: memref<2x8x256xf32, #tpu.memory_space<vmem>>, %arg7: memref<2x8x256xf32, #tpu.memory_space<vmem>>, %arg8: memref<2x8x256xf32, #tpu.memory_space<vmem>>, %arg9: memref<2x51xf32, #tpu.memory_space<vmem>>, %arg10: memref<2x51xf32, #tpu.memory_space<vmem>>, %arg11: memref<2x2048xf32, #tpu.memory_space<vmem>>, %arg12: memref<2x2048xf32, #tpu.memory_space<vmem>>, %arg13: memref<1x8x128xf32, #tpu.memory_space<vmem>>) attributes {dimension_semantics = [#tpu.dimension_semantics<parallel>, #tpu.dimension_semantics<arbitrary>, #tpu.dimension_semantics<arbitrary>], iteration_bounds = array<i64: 1, 1, 1>, scalar_prefetch = 0 : i64, scratch_operands = 0 : i64, tpu.core_type = #tpu.core_type<tc>, window_params = [{transform_indices = @transform_0, window_bounds = array<i64: 2, 8, 256>}, {transform_indices = @transform_1, window_bounds = array<i64: 2, 1, 256>}, {transform_indices = @transform_2, window_bounds = array<i64: 2, 8, 256>}, {transform_indices = @transform_3, window_bounds = array<i64: 2, 8, 256>}, {transform_indices = @transform_4, window_bounds = array<i64: 2, 8, 256>}, {transform_indices = @transform_5, window_bounds = array<i64: 2, 8, 256>}, {pipeline_mode = #tpu.pipeline_mode<synchronous>, transform_indices = @transform_6, window_bounds = array<i64: 2, 51>}, {pipeline_mode = #tpu.pipeline_mode<synchronous>, transform_indices = @transform_7, window_bounds = array<i64: 2, 51>}, {pipeline_mode = #tpu.pipeline_mode<synchronous>, transform_indices = @transform_8, window_bounds = array<i64: 2, 2048>}, {pipeline_mode = #tpu.pipeline_mode<synchronous>, transform_indices = @transform_9, window_bounds = array<i64: 2, 2048>}, {transform_indices = @transform_10, window_bounds = array<i64: 1, 8, 128>}]} {
    %c0_i32 = arith.constant 0 : i32
    %0 = arith.cmpi eq, %arg1, %c0_i32 : i32
    %c0_i32_0 = arith.constant 0 : i32
    %1 = arith.cmpi eq, %arg2, %c0_i32_0 : i32
    %2 = arith.andi %0, %1 : i1
    %3 = arith.extui %2 : i1 to i32
    %c0_i32_1 = arith.constant 0 : i32
    %4 = arith.cmpi ne, %3, %c0_i32_1 : i32
    scf.if %4 {
      %cst_43 = arith.constant 0.000000e+00 : f32
      %96 = vector.broadcast %cst_43 : f32 to vector<1x8x128xf32>
      %c0_44 = arith.constant 0 : index
      %c0_45 = arith.constant 0 : index
      %c0_46 = arith.constant 0 : index
      %97 = vector.load %arg13[%c0_44, %c0_45, %c0_46] : memref<1x8x128xf32, #tpu.memory_space<vmem>>, vector<1x8x128xf32>
      tpu.vector_store %arg13[%c0_44, %c0_45, %c0_46], %96 {strides = array<i32>} : memref<1x8x128xf32, #tpu.memory_space<vmem>>, vector<1x8x128xf32>,
    } else {
    }
    %c0 = arith.constant 0 : index
    %c0_2 = arith.constant 0 : index
    %c0_3 = arith.constant 0 : index
    %5 = vector.load %arg3[%c0, %c0_2, %c0_3] : memref<2x8x256xf32, #tpu.memory_space<vmem>>, vector<2x8x256xf32>
    %c0_4 = arith.constant 0 : index
    %c0_5 = arith.constant 0 : index
    %c0_6 = arith.constant 0 : index
    %6 = vector.load %arg4[%c0_4, %c0_5, %c0_6] : memref<2x1x256xi32, #tpu.memory_space<vmem>>, vector<2x1x256xi32>
    %cst = arith.constant dense<0xFF800000> : vector<2x256xf32>
    %7 = vector.multi_reduction <maximumf>, %5, %cst [1] : vector<2x8x256xf32> to vector<2x256xf32>
    %8 = vector.shape_cast %7 : vector<2x256xf32> to vector<2x1x256xf32>
    %9 = vector.broadcast %8 : vector<2x1x256xf32> to vector<2x8x256xf32>
    %10 = arith.subf %5, %9 : vector<2x8x256xf32>
    %11 = math.exp %10 : vector<2x8x256xf32>
    %cst_7 = arith.constant dense<0.000000e+00> : vector<2x256xf32>
    %12 = vector.multi_reduction <add>, %11, %cst_7 [1] : vector<2x8x256xf32> to vector<2x256xf32>
    %13 = vector.shape_cast %12 : vector<2x256xf32> to vector<2x1x256xf32>
    %14 = tpu.iota {dimensions = array<i32: 1>} : vector<2x8x256xi32>
    %15 = vector.broadcast %6 : vector<2x1x256xi32> to vector<2x8x256xi32>
    %16 = arith.cmpi eq, %14, %15 : vector<2x8x256xi32>
    %cst_8 = arith.constant 0.000000e+00 : f32
    %17 = vector.broadcast %cst_8 : f32 to vector<2x8x256xf32>
    %18 = arith.select %16, %10, %17 : vector<2x8x256xi1>, vector<2x8x256xf32>
    %cst_9 = arith.constant dense<0.000000e+00> : vector<2x256xf32>
    %19 = vector.multi_reduction <add>, %18, %cst_9 [1] : vector<2x8x256xf32> to vector<2x256xf32>
    %20 = vector.shape_cast %19 : vector<2x256xf32> to vector<2x1x256xf32>
    %21 = math.log %13 : vector<2x1x256xf32>
    %22 = arith.subf %21, %20 : vector<2x1x256xf32>
    %23 = vector.extract_strided_slice %22 {offsets = [0, 0, 0], sizes = [2, 1, 128], strides = [1, 1, 1]} : vector<2x1x256xf32> to vector<2x1x128xf32>
    %24 = vector.extract_strided_slice %22 {offsets = [0, 0, 128], sizes = [2, 1, 128], strides = [1, 1, 1]} : vector<2x1x256xf32> to vector<2x1x128xf32>
    %25 = arith.addf %23, %24 : vector<2x1x128xf32>
    %cst_10 = arith.constant dense<0.000000e+00> : vector<128xf32>
    %26 = vector.multi_reduction <add>, %25, %cst_10 [0, 1] : vector<2x1x128xf32> to vector<128xf32>
    %27 = vector.shape_cast %26 : vector<128xf32> to vector<1x1x128xf32>
    %28 = vector.shape_cast %27 : vector<1x1x128xf32> to vector<1x128xf32>
    %c0_11 = arith.constant 0 : index
    %c0_12 = arith.constant 0 : index
    %c0_13 = arith.constant 0 : index
    %29 = vector.load %arg5[%c0_11, %c0_12, %c0_13] : memref<2x8x256xf32, #tpu.memory_space<vmem>>, vector<2x8x256xf32>
    %c0_14 = arith.constant 0 : index
    %c0_15 = arith.constant 0 : index
    %c0_16 = arith.constant 0 : index
    %30 = vector.load %arg6[%c0_14, %c0_15, %c0_16] : memref<2x8x256xf32, #tpu.memory_space<vmem>>, vector<2x8x256xf32>
    %31 = arith.subf %29, %30 : vector<2x8x256xf32>
    %32 = math.absf %31 : vector<2x8x256xf32>
    %cst_17 = arith.constant 1.000000e+00 : f32
    %33 = vector.broadcast %cst_17 : f32 to vector<2x8x256xf32>
    %34 = arith.cmpf olt, %32, %33 : vector<2x8x256xf32>
    %cst_18 = arith.constant 5.000000e-01 : f32
    %35 = vector.broadcast %cst_18 : f32 to vector<2x8x256xf32>
    %36 = arith.mulf %35, %31 : vector<2x8x256xf32>
    %37 = arith.mulf %36, %31 : vector<2x8x256xf32>
    %cst_19 = arith.constant 5.000000e-01 : f32
    %38 = vector.broadcast %cst_19 : f32 to vector<2x8x256xf32>
    %39 = arith.subf %32, %38 : vector<2x8x256xf32>
    %40 = arith.select %34, %37, %39 : vector<2x8x256xi1>, vector<2x8x256xf32>
    %41 = vector.extract_strided_slice %40 {offsets = [0, 0, 0], sizes = [2, 8, 128], strides = [1, 1, 1]} : vector<2x8x256xf32> to vector<2x8x128xf32>
    %42 = vector.extract_strided_slice %40 {offsets = [0, 0, 128], sizes = [2, 8, 128], strides = [1, 1, 1]} : vector<2x8x256xf32> to vector<2x8x128xf32>
    %43 = arith.addf %41, %42 : vector<2x8x128xf32>
    %cst_20 = arith.constant dense<0.000000e+00> : vector<128xf32>
    %44 = vector.multi_reduction <add>, %43, %cst_20 [0, 1] : vector<2x8x128xf32> to vector<128xf32>
    %45 = vector.shape_cast %44 : vector<128xf32> to vector<1x1x128xf32>
    %46 = vector.shape_cast %45 : vector<1x1x128xf32> to vector<1x128xf32>
    %c0_21 = arith.constant 0 : index
    %c0_22 = arith.constant 0 : index
    %c0_23 = arith.constant 0 : index
    %47 = vector.load %arg7[%c0_21, %c0_22, %c0_23] : memref<2x8x256xf32, #tpu.memory_space<vmem>>, vector<2x8x256xf32>
    %c0_24 = arith.constant 0 : index
    %c0_25 = arith.constant 0 : index
    %c0_26 = arith.constant 0 : index
    %48 = vector.load %arg8[%c0_24, %c0_25, %c0_26] : memref<2x8x256xf32, #tpu.memory_space<vmem>>, vector<2x8x256xf32>
    %49 = arith.subf %47, %48 : vector<2x8x256xf32>
    %50 = math.absf %49 : vector<2x8x256xf32>
    %cst_27 = arith.constant 1.000000e+00 : f32
    %51 = vector.broadcast %cst_27 : f32 to vector<2x8x256xf32>
    %52 = arith.cmpf olt, %50, %51 : vector<2x8x256xf32>
    %cst_28 = arith.constant 5.000000e-01 : f32
    %53 = vector.broadcast %cst_28 : f32 to vector<2x8x256xf32>
    %54 = arith.mulf %53, %49 : vector<2x8x256xf32>
    %55 = arith.mulf %54, %49 : vector<2x8x256xf32>
    %cst_29 = arith.constant 5.000000e-01 : f32
    %56 = vector.broadcast %cst_29 : f32 to vector<2x8x256xf32>
    %57 = arith.subf %50, %56 : vector<2x8x256xf32>
    %58 = arith.select %52, %55, %57 : vector<2x8x256xi1>, vector<2x8x256xf32>
    %59 = vector.extract_strided_slice %58 {offsets = [0, 0, 0], sizes = [2, 8, 128], strides = [1, 1, 1]} : vector<2x8x256xf32> to vector<2x8x128xf32>
    %60 = vector.extract_strided_slice %58 {offsets = [0, 0, 128], sizes = [2, 8, 128], strides = [1, 1, 1]} : vector<2x8x256xf32> to vector<2x8x128xf32>
    %61 = arith.addf %59, %60 : vector<2x8x128xf32>
    %cst_30 = arith.constant dense<0.000000e+00> : vector<128xf32>
    %62 = vector.multi_reduction <add>, %61, %cst_30 [0, 1] : vector<2x8x128xf32> to vector<128xf32>
    %63 = vector.shape_cast %62 : vector<128xf32> to vector<1x1x128xf32>
    %64 = vector.shape_cast %63 : vector<1x1x128xf32> to vector<1x128xf32>
    %65 = tpu.iota {dimensions = array<i32: 0>} : vector<8x128xi32>
    %c0_i32_31 = arith.constant 0 : i32
    %66 = vector.broadcast %c0_i32_31 : i32 to vector<8x128xi32>
    %67 = arith.cmpi eq, %65, %66 : vector<8x128xi32>
    %cst_32 = arith.constant 0.000000e+00 : f32
    %68 = vector.shape_cast %28 : vector<1x128xf32> to vector<1x128xf32>
    %69 = vector.broadcast %68 : vector<1x128xf32> to vector<8x128xf32>
    %70 = vector.broadcast %cst_32 : f32 to vector<8x128xf32>
    %71 = arith.select %67, %69, %70 : vector<8x128xi1>, vector<8x128xf32>
    %c1_i32 = arith.constant 1 : i32
    %72 = vector.broadcast %c1_i32 : i32 to vector<8x128xi32>
    %73 = arith.cmpi eq, %65, %72 : vector<8x128xi32>
    %cst_33 = arith.constant 0.000000e+00 : f32
    %74 = vector.shape_cast %46 : vector<1x128xf32> to vector<1x128xf32>
    %75 = vector.broadcast %74 : vector<1x128xf32> to vector<8x128xf32>
    %76 = vector.broadcast %cst_33 : f32 to vector<8x128xf32>
    %77 = arith.select %73, %75, %76 : vector<8x128xi1>, vector<8x128xf32>
    %78 = arith.addf %71, %77 : vector<8x128xf32>
    %c2_i32 = arith.constant 2 : i32
    %79 = vector.broadcast %c2_i32 : i32 to vector<8x128xi32>
    %80 = arith.cmpi eq, %65, %79 : vector<8x128xi32>
    %cst_34 = arith.constant 0.000000e+00 : f32
    %81 = vector.shape_cast %64 : vector<1x128xf32> to vector<1x128xf32>
    %82 = vector.broadcast %81 : vector<1x128xf32> to vector<8x128xf32>
    %83 = vector.broadcast %cst_34 : f32 to vector<8x128xf32>
    %84 = arith.select %80, %82, %83 : vector<8x128xi1>, vector<8x128xf32>
    %85 = arith.addf %78, %84 : vector<8x128xf32>
    %c0_35 = arith.constant 0 : index
    %c0_36 = arith.constant 0 : index
    %c0_37 = arith.constant 0 : index
    %86 = vector.load %arg13[%c0_35, %c0_36, %c0_37] : memref<1x8x128xf32, #tpu.memory_space<vmem>>, vector<1x8x128xf32>
    %87 = vector.shape_cast %86 : vector<1x8x128xf32> to vector<8x128xf32>
    %88 = arith.addf %87, %85 : vector<8x128xf32>
    %c0_38 = arith.constant 0 : index
    %c0_39 = arith.constant 0 : index
    %c0_40 = arith.constant 0 : index
    %89 = vector.load %arg13[%c0_38, %c0_39, %c0_40] : memref<1x8x128xf32, #tpu.memory_space<vmem>>, vector<1x8x128xf32>
    %90 = vector.shape_cast %89 : vector<1x8x128xf32> to vector<8x128xf32>
    %91 = vector.shape_cast %88 : vector<8x128xf32> to vector<1x8x128xf32>
    tpu.vector_store %arg13[%c0_38, %c0_39, %c0_40], %91 {strides = array<i32>} : memref<1x8x128xf32, #tpu.memory_space<vmem>>, vector<1x8x128xf32>,
    %c0_i32_41 = arith.constant 0 : i32
    %92 = arith.cmpi eq, %arg0, %c0_i32_41 : i32
    %93 = arith.andi %2, %92 : i1
    %94 = arith.extui %93 : i1 to i32
    %c0_i32_42 = arith.constant 0 : i32
    %95 = arith.cmpi ne, %94, %c0_i32_42 : i32
    scf.if %95 {
      %c0_43 = arith.constant 0 : index
      %c0_44 = arith.constant 0 : index
      %96 = vector.load %arg9[%c0_43, %c0_44] : memref<2x51xf32, #tpu.memory_space<vmem>>, vector<2x51xf32>
      %c0_45 = arith.constant 0 : index
      %c0_46 = arith.constant 0 : index
      %97 = vector.load %arg10[%c0_45, %c0_46] : memref<2x51xf32, #tpu.memory_space<vmem>>, vector<2x51xf32>
      %98 = arith.subf %96, %97 : vector<2x51xf32>
      %99 = arith.mulf %98, %98 : vector<2x51xf32>
      %100 = vector.shape_cast %99 : vector<2x51xf32> to vector<1x2x51xf32>
      %cst_47 = arith.constant dense<0.000000e+00> : vector<1xf32>
      %101 = vector.multi_reduction <add>, %100, %cst_47 [1, 2] : vector<1x2x51xf32> to vector<1xf32>
      %102 = vector.shape_cast %101 : vector<1xf32> to vector<1x1x1xf32>
      %103 = vector.extract %102[0, 0, 0] : f32 from vector<1x1x1xf32>
      %c0_48 = arith.constant 0 : index
      %c0_49 = arith.constant 0 : index
      %104 = vector.load %arg11[%c0_48, %c0_49] : memref<2x2048xf32, #tpu.memory_space<vmem>>, vector<2x2048xf32>
      %c0_50 = arith.constant 0 : index
      %c0_51 = arith.constant 0 : index
      %105 = vector.load %arg12[%c0_50, %c0_51] : memref<2x2048xf32, #tpu.memory_space<vmem>>, vector<2x2048xf32>
      %106 = arith.subf %104, %105 : vector<2x2048xf32>
      %107 = arith.mulf %106, %106 : vector<2x2048xf32>
      %108 = vector.shape_cast %107 : vector<2x2048xf32> to vector<1x2x2048xf32>
      %cst_52 = arith.constant dense<0.000000e+00> : vector<1xf32>
      %109 = vector.multi_reduction <add>, %108, %cst_52 [1, 2] : vector<1x2x2048xf32> to vector<1xf32>
      %110 = vector.shape_cast %109 : vector<1xf32> to vector<1x1x1xf32>
      %111 = vector.extract %110[0, 0, 0] : f32 from vector<1x1x1xf32>
      %112 = tpu.iota {dimensions = array<i32: 0>} : vector<8x128xi32>
      %113 = tpu.iota {dimensions = array<i32: 1>} : vector<8x128xi32>
      %c3_i32 = arith.constant 3 : i32
      %114 = vector.broadcast %c3_i32 : i32 to vector<8x128xi32>
      %115 = arith.cmpi eq, %112, %114 : vector<8x128xi32>
      %c0_i32_53 = arith.constant 0 : i32
      %116 = vector.broadcast %c0_i32_53 : i32 to vector<8x128xi32>
      %117 = arith.cmpi eq, %113, %116 : vector<8x128xi32>
      %118 = arith.andi %115, %117 : vector<8x128xi1>
      %cst_54 = arith.constant 0.000000e+00 : f32
      %119 = vector.broadcast %103 : f32 to vector<8x128xf32>
      %120 = vector.broadcast %cst_54 : f32 to vector<8x128xf32>
      %121 = arith.select %118, %119, %120 : vector<8x128xi1>, vector<8x128xf32>
      %c4_i32 = arith.constant 4 : i32
      %122 = vector.broadcast %c4_i32 : i32 to vector<8x128xi32>
      %123 = arith.cmpi eq, %112, %122 : vector<8x128xi32>
      %c0_i32_55 = arith.constant 0 : i32
      %124 = vector.broadcast %c0_i32_55 : i32 to vector<8x128xi32>
      %125 = arith.cmpi eq, %113, %124 : vector<8x128xi32>
      %126 = arith.andi %123, %125 : vector<8x128xi1>
      %cst_56 = arith.constant 0.000000e+00 : f32
      %127 = vector.broadcast %111 : f32 to vector<8x128xf32>
      %128 = vector.broadcast %cst_56 : f32 to vector<8x128xf32>
      %129 = arith.select %126, %127, %128 : vector<8x128xi1>, vector<8x128xf32>
      %130 = arith.addf %121, %129 : vector<8x128xf32>
      %c0_57 = arith.constant 0 : index
      %c0_58 = arith.constant 0 : index
      %c0_59 = arith.constant 0 : index
      %131 = vector.load %arg13[%c0_57, %c0_58, %c0_59] : memref<1x8x128xf32, #tpu.memory_space<vmem>>, vector<1x8x128xf32>
      %132 = vector.shape_cast %131 : vector<1x8x128xf32> to vector<8x128xf32>
      %133 = arith.addf %132, %130 : vector<8x128xf32>
      %c0_60 = arith.constant 0 : index
      %c0_61 = arith.constant 0 : index
      %c0_62 = arith.constant 0 : index
      %134 = vector.load %arg13[%c0_60, %c0_61, %c0_62] : memref<1x8x128xf32, #tpu.memory_space<vmem>>, vector<1x8x128xf32>
      %135 = vector.shape_cast %134 : vector<1x8x128xf32> to vector<8x128xf32>
      %136 = vector.shape_cast %133 : vector<8x128xf32> to vector<1x8x128xf32>
      tpu.vector_store %arg13[%c0_60, %c0_61, %c0_62], %136 {strides = array<i32>} : memref<1x8x128xf32, #tpu.memory_space<vmem>>, vector<1x8x128xf32>,
    } else {
    }
    return
  }
  func.func @transform_0(%arg0: i32, %arg1: i32, %arg2: i32) -> (i32, i32, i32) {
    %c1_i32 = arith.constant 1 : i32
    %0 = arith.muli %arg0, %c1_i32 : i32
    %1 = arith.addi %0, %arg1 : i32
    %c0_i32 = arith.constant 0 : i32
    %c0_i32_0 = arith.constant 0 : i32
    return %1, %c0_i32, %arg2 : i32, i32, i32
  }
  func.func @transform_1(%arg0: i32, %arg1: i32, %arg2: i32) -> (i32, i32, i32) {
    %c1_i32 = arith.constant 1 : i32
    %0 = arith.muli %arg0, %c1_i32 : i32
    %1 = arith.addi %0, %arg1 : i32
    %c0_i32 = arith.constant 0 : i32
    %c0_i32_0 = arith.constant 0 : i32
    return %1, %c0_i32, %arg2 : i32, i32, i32
  }
  func.func @transform_2(%arg0: i32, %arg1: i32, %arg2: i32) -> (i32, i32, i32) {
    %c1_i32 = arith.constant 1 : i32
    %0 = arith.muli %arg0, %c1_i32 : i32
    %1 = arith.addi %0, %arg1 : i32
    %c0_i32 = arith.constant 0 : i32
    %c0_i32_0 = arith.constant 0 : i32
    return %1, %c0_i32, %arg2 : i32, i32, i32
  }
  func.func @transform_3(%arg0: i32, %arg1: i32, %arg2: i32) -> (i32, i32, i32) {
    %c1_i32 = arith.constant 1 : i32
    %0 = arith.muli %arg0, %c1_i32 : i32
    %1 = arith.addi %0, %arg1 : i32
    %c0_i32 = arith.constant 0 : i32
    %c0_i32_0 = arith.constant 0 : i32
    return %1, %c0_i32, %arg2 : i32, i32, i32
  }
  func.func @transform_4(%arg0: i32, %arg1: i32, %arg2: i32) -> (i32, i32, i32) {
    %c1_i32 = arith.constant 1 : i32
    %0 = arith.muli %arg0, %c1_i32 : i32
    %1 = arith.addi %0, %arg1 : i32
    %c0_i32 = arith.constant 0 : i32
    %c0_i32_0 = arith.constant 0 : i32
    return %1, %c0_i32, %arg2 : i32, i32, i32
  }
  func.func @transform_5(%arg0: i32, %arg1: i32, %arg2: i32) -> (i32, i32, i32) {
    %c1_i32 = arith.constant 1 : i32
    %0 = arith.muli %arg0, %c1_i32 : i32
    %1 = arith.addi %0, %arg1 : i32
    %c0_i32 = arith.constant 0 : i32
    %c0_i32_0 = arith.constant 0 : i32
    return %1, %c0_i32, %arg2 : i32, i32, i32
  }
  func.func @transform_6(%arg0: i32, %arg1: i32, %arg2: i32) -> (i32, i32) {
    %c0_i32 = arith.constant 0 : i32
    %c0_i32_0 = arith.constant 0 : i32
    %c0_i32_1 = arith.constant 0 : i32
    return %c0_i32, %c0_i32_0 : i32, i32
  }
  func.func @transform_7(%arg0: i32, %arg1: i32, %arg2: i32) -> (i32, i32) {
    %c0_i32 = arith.constant 0 : i32
    %c0_i32_0 = arith.constant 0 : i32
    %c0_i32_1 = arith.constant 0 : i32
    return %c0_i32, %c0_i32_0 : i32, i32
  }
  func.func @transform_8(%arg0: i32, %arg1: i32, %arg2: i32) -> (i32, i32) {
    %c0_i32 = arith.constant 0 : i32
    %c0_i32_0 = arith.constant 0 : i32
    %c0_i32_1 = arith.constant 0 : i32
    return %c0_i32, %c0_i32_0 : i32, i32
  }
  func.func @transform_9(%arg0: i32, %arg1: i32, %arg2: i32) -> (i32, i32) {
    %c0_i32 = arith.constant 0 : i32
    %c0_i32_0 = arith.constant 0 : i32
    %c0_i32_1 = arith.constant 0 : i32
    return %c0_i32, %c0_i32_0 : i32, i32
  }
  func.func @transform_10(%arg0: i32, %arg1: i32, %arg2: i32) -> (i32, i32, i32) {
    %c0_i32 = arith.constant 0 : i32
    %c0_i32_0 = arith.constant 0 : i32
    %c0_i32_1 = arith.constant 0 : i32
    return %arg0, %c0_i32, %c0_i32_0 : i32, i32, i32
  }
}

</mosaic_0001>

<bundles_post_ra>
// kernel: tpu_custom_call.1
= control target key start
LH: loop header
LB: loop body
LE: loop exit
PB: predicated region body
PF: predicated region fallthrough
CT: control target
= control target key end

     0   :  { %15 = vsyncpa [#allocation3], 0  ;;  %s1026_s0 = inlined_call_operand.hbm [shape: f32[2,8,256], index: 0, kind: input, shape index: {}]   ;;  %s1027_s1 = inlined_call_operand.hbm [shape: s32[2,1,256], index: 1, kind: input, shape index: {}]   ;;  %s1028_s2 = inlined_call_operand.hbm [shape: f32[2,8,256], index: 2, kind: input, shape index: {}]   ;;  %s1029_s3 = inlined_call_operand.hbm [shape: f32[2,8,256], index: 3, kind: input, shape index: {}]   ;;  %s1030_s4 = inlined_call_operand.hbm [shape: f32[2,8,256], index: 4, kind: input, shape index: {}]   ;;  %s1031_s5 = inlined_call_operand.hbm [shape: f32[2,8,256], index: 5, kind: input, shape index: {}]   ;;  %s1032_s6 = inlined_call_operand.vmem [shape: f32[2,51], index: 6, kind: input, shape index: {}]   ;;  %s1033_s7 = inlined_call_operand.vmem [shape: f32[2,51], index: 7, kind: input, shape index: {}]   ;;  %s1034_s8 = inlined_call_operand.hbm [shape: f32[2,2048], index: 8, kind: input, shape index: {}]   ;;  %s1035_s9 = inlined_call_operand.hbm [shape: f32[2,2048], index: 9, kind: input, shape index: {}]   ;;  %s1036_s10 = inlined_call_operand.hbm [shape: f32[1,8,128], index: 10, kind: output, shape index: {}]  }
   0x1   :  { %16 = vsyncpa [#allocation6], 0 }
   0x2   :  { %17 = vsyncpa [#allocation9], 0 }
   0x3   :  { %18 = vsyncpa [#allocation12], 0 }
   0x4   :  { %19 = vsyncpa [#allocation15], 0  ;;  %s47_s15 = sshll.u32 %s1027_s1, 4  ;;  %s48_s15 = int_to_ptr.hbm [resolvable:$true] %s47_s15 }
   0x5   :  { %20 = vsyncpa [#allocation4], 0  ;;  %s858_s16 = smov [#allocation5]   ;;  %s859_s18 = smov 32  }
   0x6   :  { %s49_s17 = sshll.u32 %s858_s16, 4  ;;  %s860_s19 = smov 2   ;;  %s50_s17 = int_to_ptr.vmem [resolvable:$true] %s49_s17 }
   0x7   :  { %55 = dma.hbm_to_vmem [thread:$0]  %s48_s15, 64, %s50_s17, [#allocation6], %s859_s18, %s859_s18, %s860_s19  }
   0x8   :  { %s83_s22 = sshll.u32 %s1029_s3, 4  ;;  %s861_s23 = smov [#allocation8]   ;;  %s84_s22 = int_to_ptr.hbm [resolvable:$true] %s83_s22 }
   0x9   :  { %s85_s24 = sshll.u32 %s861_s23, 4  ;;  %s119_s27 = sshll.u32 %s1031_s5, 4  ;;  %s86_s24 = int_to_ptr.vmem [resolvable:$true] %s85_s24  ;;  %s120_s27 = int_to_ptr.hbm [resolvable:$true] %s119_s27 }
   0xa   :  { %s862_s1 = smov 256   ;;  %s863_s28 = smov 16  }
   0xb   :  { %91 = dma.hbm_to_vmem [thread:$0]  %s84_s22, 512, %s86_s24, [#allocation9], %s862_s1, %s862_s1, %s863_s28  }
   0xc   :  { %s30_s11 = sshll.u32 %s1026_s0, 4  ;;  %s864_s12 = smov [#allocation11]   ;;  %s31_s11 = int_to_ptr.hbm [resolvable:$true] %s30_s11 }
   0xd   :  { %s121_s13 = sshll.u32 %s864_s12, 4  ;;  %s865_s3 = smov [#allocation2]   ;;  %s122_s13 = int_to_ptr.vmem [resolvable:$true] %s121_s13 }
   0xe   :  { %127 = dma.hbm_to_vmem [thread:$0]  %s120_s27, 512, %s122_s13, [#allocation12], %s862_s1, %s862_s1, %s863_s28  }
   0xf   :  { %s32_s14 = sshll.u32 %s865_s3, 4  ;;  %s65_s5 = sshll.u32 %s1028_s2, 4  ;;  %s33_s14 = int_to_ptr.vmem [resolvable:$true] %s32_s14  ;;  %s66_s5 = int_to_ptr.hbm [resolvable:$true] %s65_s5 }
  0x10   :  { %38 = dma.hbm_to_vmem [thread:$0]  %s31_s11, 512, %s33_s14, [#allocation3], %s862_s1, %s862_s1, %s863_s28  }
  0x11   :  { %s101_s19 = sshll.u32 %s1030_s4, 4  ;;  %s866_s20 = smov [#allocation7]   ;;  %s102_s19 = int_to_ptr.hbm [resolvable:$true] %s101_s19 }
  0x12   :  { %s67_s0 = sshll.u32 %s866_s20, 4  ;;  %s867_s21 = smov [#allocation10]   ;;  %s68_s0 = int_to_ptr.vmem [resolvable:$true] %s67_s0 }
  0x13   :  { %73 = dma.hbm_to_vmem [thread:$0]  %s66_s5, 512, %s68_s0, [#allocation6], %s862_s1, %s862_s1, %s863_s28  }
  0x14   :  { %s103_s22 = sshll.u32 %s867_s21, 4  ;;  %s137_s25 = sshll.u32 %s1034_s8, 4  ;;  %s104_s22 = int_to_ptr.vmem [resolvable:$true] %s103_s22  ;;  %s138_s25 = int_to_ptr.hbm [resolvable:$true] %s137_s25 }
  0x15   :  { %109 = dma.hbm_to_vmem [thread:$0]  %s102_s19, 512, %s104_s22, [#allocation9], %s862_s1, %s862_s1, %s863_s28  }
  0x16   :  { %s148_s27 = sshll.u32 %s1035_s9, 4  ;;  %s868_s29 = smov [#allocation13]   ;;  %s149_s27 = int_to_ptr.hbm [resolvable:$true] %s148_s27 }
  0x17   :  { %s139_s4 = sshll.u32 %s868_s29, 4  ;;  %s869_s30 = smov [#allocation14]   ;;  %s140_s4 = int_to_ptr.vmem [resolvable:$true] %s139_s4 }
  0x18   :  { %142 = dma.hbm_to_vmem [thread:$0]  %s138_s25, 512, %s140_s4, [#allocation12]  }
  0x19   :  { %s150_s11 = sshll.u32 %s869_s30, 4  ;;  %s151_s11 = int_to_ptr.vmem [resolvable:$true] %s150_s11 }
  0x1a   :  { %153 = dma.hbm_to_vmem [thread:$0]  %s149_s27, 512, %s151_s11, [#allocation15]  }
  0x1b   :  { %846 = dma.done.wait [#allocation3], 512  }
  0x1c   :  { %847 = vsyncadd [#allocation3], 4294966784 }
  0x1d   :  { %848 = dma.done.wait [#allocation6], 576  }
  0x1e   :  { %849 = vsyncadd [#allocation6], 4294966720 }
  0x1f   :  { %850 = dma.done.wait [#allocation9], 1024  }
  0x20   :  { %851 = vsyncadd [#allocation9], 4294966272 }
  0x21   :  { %852 = dma.done.wait [#allocation12], 1024  }
  0x22   :  { %853 = vsyncadd [#allocation12], 4294966272 }
  0x23   :  { %854 = dma.done.wait [#allocation15], 512  }
  0x24   :  { %855 = vsyncadd [#allocation15], 4294966784  ;;  %v439_v0 = vld [vmem:[%s1032_s6] sm:$0x3]  ;;  %v454_v2 = vld [vmem:[#allocation13] sm:$0xff]  ;;  %vm443_vm0 = vcmask 410624  }
  0x25   :  { %v440_v1 = vld [vmem:[%s1033_s7] sm:$0x3]  ;;  %v455_v4 = vld [vmem:[#allocation13 + $0x8] sm:$0xff]  ;;  %v458_v5 = vld [vmem:[#allocation14] sm:$0xff]  ;;  %vm511_vm1 = vcmask 1041408   ;;  %vm323_vm10 = vcmask 1040384  }
  0x26   :  { %v441_v3 = vsub.f32 %v439_v0, %v440_v1  ;;  %v459_v6 = vld [vmem:[#allocation14 + $0x8] sm:$0xff]  ;;  %v462_v8 = vsub.f32 %v454_v2, %v458_v5  ;;  %v456_v13 = vld [vmem:[#allocation13 + $0x10] sm:$0xff]  ;;  %v457_v15 = vld [vmem:[#allocation13 + $0x18] sm:$0xff]  ;;  %s870_s12 = smov [#allocation16]   ;;  %s574_s15 = sshll.u32 %s1036_s10, 4  ;;  %s575_s15 = int_to_ptr.hbm [resolvable:$true] %s574_s15 }
  0x27   :  { %v463_v9 = vsub.f32 %v455_v4, %v459_v6  ;;  %v460_v14 = vld [vmem:[#allocation14 + $0x10] sm:$0xff]  ;;  %v461_v16 = vld [vmem:[#allocation14 + $0x18] sm:$0xff]  ;;  %s572_s13 = sshll.u32 %s870_s12, 4  ;;  %s573_s13 = int_to_ptr.vmem [resolvable:$true] %s572_s13 }
  0x28   :  { %v442_v7 = vmul.f32 %v441_v3, %v441_v3  ;;  %v466_v11 = vmul.f32 %v462_v8, %v462_v8  ;;  %v464_v17 = vsub.f32 %v456_v13, %v460_v14  ;;  %v465_v18 = vsub.f32 %v457_v15, %v461_v16 }
  0x29   :  { %v467_v12 = vmul.f32 %v463_v9, %v463_v9  ;;  %v205_v9 = vld [vmem:[#allocation2] sm:$0xff] }
  0x2a   :  { %v444_v10 = vsel %vm443_vm0, %v442_v7, 0.0  ;;  %474 = vst [vmem:[#allocation1] ss:$4 sm:$0xff] %v466_v11  ;;  %v468_v19 = vmul.f32 %v464_v17, %v464_v17  ;;  %v469_v22 = vmul.f32 %v465_v18, %v465_v18  ;;  %v207_v11 = vld [vmem:[#allocation2 + $0x10] sm:$0xff]  ;;  %v211_v13 = vrot.slane %v205_v9, 4 }
  0x2b   :  { %445 = vadd.xlane.f32.xlu0 %v444_v10  ;;  %476 = vst [vmem:[#allocation1 + $0x20] ss:$4 sm:$0xff] %v467_v12  ;;  %v206_v10 = vld [vmem:[#allocation2 + $0x8] sm:$0xff]  ;;  %v208_v12 = vld [vmem:[#allocation2 + $0x18] sm:$0xff]  ;;  %v223_v15 = vrot.slane %v207_v11, 4 }
  0x2c   :  { %v217_v14 = vrot.slane %v206_v10, 4  ;;  %v229_v17 = vrot.slane %v208_v12, 4  ;;  %v212_v18 = vmax.f32 %v205_v9, %v211_v13 }
  0x31   :  { %v477_v20 = vld.sshfl [vmem:[#allocation1] sm:$0xff pattern:$0x73625140]  ;;  %v478_v21 = vld.sshfl [vmem:[#allocation1 + $0x8] sm:$0xff pattern:$0x73625140] }
  0x32   :  { %v479_v23 = vld.sshfl [vmem:[#allocation1 + $0x10] sm:$0xff pattern:$0x73625140]  ;;  %v480_v24 = vld.sshfl [vmem:[#allocation1 + $0x18] sm:$0xff pattern:$0x73625140] }
  0x33   :  { %v481_v25 = vld.sshfl [vmem:[#allocation1 + $0x20] sm:$0xff pattern:$0x73625140]  ;;  %v482_v26 = vld.sshfl [vmem:[#allocation1 + $0x28] sm:$0xff pattern:$0x73625140] }
  0x34   :  { %v483_v27 = vld.sshfl [vmem:[#allocation1 + $0x30] sm:$0xff pattern:$0x73625140]  ;;  %v484_v28 = vld.sshfl [vmem:[#allocation1 + $0x38] sm:$0xff pattern:$0x73625140] }
  0x35   :  { %485 = vst [vmem:[#allocation1] ss:$4 sm:$0xff] %v468_v19  ;;  %v512_v29 = vsel %vm511_vm1, %v477_v20, 0.0  ;;  %v513_v30 = vsel %vm511_vm1, %v478_v21, 0.0  ;;  %v515_v31 = vsel %vm511_vm1, %v479_v23, 0.0  ;;  %v517_v33 = vsel %vm511_vm1, %v480_v24, 0.0 }
  0x36   :  { %486 = vst [vmem:[#allocation1 + $0x20] ss:$4 sm:$0xff] %v469_v22  ;;  %v514_v32 = vadd.f32 %v513_v30, %v512_v29  ;;  %v519_v35 = vsel %vm511_vm1, %v481_v25, 0.0  ;;  %v521_v37 = vsel %vm511_vm1, %v482_v26, 0.0  ;;  %v523_v39 = vsel %vm511_vm1, %v483_v27, 0.0 }
  0x37   :  { %v525_v42 = vsel %vm511_vm1, %v484_v28, 0.0  ;;  %v218_v19 = vmax.f32 %v206_v10, %v217_v14  ;;  %v224_v20 = vmax.f32 %v207_v11, %v223_v15  ;;  %v230_v22 = vmax.f32 %v208_v12, %v229_v17 }
  0x38   :  { %v516_v34 = vadd.f32 %v515_v31, %v514_v32  ;;  %v213_v23 = vrot.slane %v212_v18, 2 }
  0x39   :  { %v219_v24 = vrot.slane %v218_v19, 2  ;;  %v225_v25 = vrot.slane %v224_v20, 2  ;;  %v231_v26 = vrot.slane %v230_v22, 2 }
  0x3a   :  { %v518_v36 = vadd.f32 %v517_v33, %v516_v34  ;;  %v214_v27 = vmax.f32 %v212_v18, %v213_v23 }
  0x3b   :  { %v220_v28 = vmax.f32 %v218_v19, %v219_v24  ;;  %v226_v29 = vmax.f32 %v224_v20, %v225_v25  ;;  %v232_v30 = vmax.f32 %v230_v22, %v231_v26 }
  0x3c   :  { %v520_v38 = vadd.f32 %v519_v35, %v518_v36  ;;  %v487_v40 = vld.sshfl [vmem:[#allocation1] sm:$0xff pattern:$0x73625140]  ;;  %v488_v43 = vld.sshfl [vmem:[#allocation1 + $0x8] sm:$0xff pattern:$0x73625140] }
  0x3d   :  { %v527_v45 = vsel %vm511_vm1, %v487_v40, 0.0  ;;  %v489_v46 = vld.sshfl [vmem:[#allocation1 + $0x10] sm:$0xff pattern:$0x73625140]  ;;  %v529_v48 = vsel %vm511_vm1, %v488_v43, 0.0  ;;  %v215_v31 = vrot.slane %v214_v27, 1 }
  0x3e   :  { %v522_v41 = vadd.f32 %v521_v37, %v520_v38  ;;  %v490_v49 = vld.sshfl [vmem:[#allocation1 + $0x18] sm:$0xff pattern:$0x73625140]  ;;  %v531_v51 = vsel %vm511_vm1, %v489_v46, 0.0  ;;  %v221_v32 = vrot.slane %v220_v28, 1  ;;  %v227_v33 = vrot.slane %v226_v29, 1 }
  0x3f   :  { %v491_v52 = vld.sshfl [vmem:[#allocation1 + $0x20] sm:$0xff pattern:$0x73625140]  ;;  %v533_v54 = vsel %vm511_vm1, %v490_v49, 0.0  ;;  %v233_v34 = vrot.slane %v232_v30, 1  ;;  %v216_v35 = vmax.f32 %v214_v27, %v215_v31  ;;  %v271_v49 = vlaneseq  ;;  %v333_v31 = vld [vmem:[#allocation7] sm:$0xff] }
  0x40   :  { %v524_v44 = vadd.f32 %v523_v39, %v522_v41  ;;  %v492_v55 = vld.sshfl [vmem:[#allocation1 + $0x28] sm:$0xff pattern:$0x73625140]  ;;  %v535_v57 = vsel %vm511_vm1, %v491_v52, 0.0  ;;  %v222_v36 = vmax.f32 %v220_v28, %v221_v32  ;;  %v228_v37 = vmax.f32 %v226_v29, %v227_v33  ;;  %v334_v32 = vld [vmem:[#allocation7 + $0x8] sm:$0xff] }
  0x41   :  { %v493_v58 = vld.sshfl [vmem:[#allocation1 + $0x30] sm:$0xff pattern:$0x73625140]  ;;  %v537_v60 = vsel %vm511_vm1, %v492_v55, 0.0  ;;  %v234_v38 = vmax.f32 %v232_v30, %v233_v34  ;;  %v235_v39 = vsub.f32 %v205_v9, %v216_v35 }
  0x42   :  { %v526_v47 = vadd.f32 %v525_v42, %v524_v44  ;;  %v494_v61 = vld.sshfl [vmem:[#allocation1 + $0x38] sm:$0xff pattern:$0x73625140]  ;;  %v539_v63 = vsel %vm511_vm1, %v493_v58, 0.0  ;;  %v236_v40 = vsub.f32 %v206_v10, %v222_v36  ;;  %v237_v41 = vsub.f32 %v207_v11, %v228_v37 }
  0x43   :  { %v541_v1 = vsel %vm511_vm1, %v494_v61, 0.0  ;;  %v238_v42 = vsub.f32 %v208_v12, %v234_v38  ;;  %v239_v43 = vmul.f32 1.442695, %v235_v39  ;;  %v335_v37 = vld [vmem:[#allocation7 + $0x10] sm:$0xff]  ;;  %v337_v38 = vld [vmem:[#allocation8] sm:$0xff] }
  0x44   :  { %v528_v50 = vadd.f32 %v527_v45, %v526_v47  ;;  %v241_v44 = vmul.f32 1.442695, %v236_v40  ;;  %v243_v45 = vmul.f32 1.442695, %v237_v41  ;;  %v209_v47 = vld [vmem:[#allocation5] sm:$0x3] }
  0x45   :  { %v245_v46 = vmul.f32 1.442695, %v238_v42  ;;  %614 = vpow2.f32 %v239_v43 }
  0x46   :  { %v530_v53 = vadd.f32 %v529_v48, %v528_v50  ;;  %v210_v48 = vld [vmem:[#allocation5 + $0x2] sm:$0x3]  ;;  %616 = vpow2.f32 %v241_v44  ;;  %v273_v50 = vperm.slane %v209_v47, 0 }
  0x47   :  { %v275_v52 = vperm.slane %v210_v48, 0  ;;  %618 = vpow2.f32 %v243_v45  ;;  %v336_v44 = vld [vmem:[#allocation7 + $0x18] sm:$0xff]  ;;  %v339_v45 = vld [vmem:[#allocation8 + $0x10] sm:$0xff] }
  0x48   :  { %v532_v56 = vadd.f32 %v531_v51, %v530_v53  ;;  %v274_v51 = vperm.slane %v209_v47, 1  ;;  %v973_v53 = vshrl.u32 %v271_v49, 7  ;;  %620 = vpow2.f32 %v245_v46  ;;  %v340_v46 = vld [vmem:[#allocation8 + $0x18] sm:$0xff] }
  0x4a   :  { %v534_v59 = vadd.f32 %v533_v54, %v532_v56  ;;  %v276_v54 = vperm.slane %v210_v48, 1  ;;  %vm277_vm2 = vcmp.eq.s32.totalorder %v973_v53, %v273_v50  ;;  %vm278_vm3 = vcmp.eq.s32.totalorder %v973_v53, %v274_v51 }
  0x4b   :  { %vm279_vm4 = vcmp.eq.s32.totalorder %v973_v53, %v275_v52  ;;  %v281_v55 = vsel %vm277_vm2, %v235_v39, 0.0  ;;  %v282_v56 = vsel %vm278_vm3, %v236_v40, 0.0  ;;  %v338_v39 = vld [vmem:[#allocation8 + $0x8] sm:$0xff]  ;;  %v341_v50 = vsub.f32 %v333_v31, %v337_v38  ;;  %v384_v31 = vld [vmem:[#allocation11 + $0x10] sm:$0xff] }
  0x4c   :  { %v536_v62 = vadd.f32 %v535_v57, %v534_v59  ;;  %vm280_vm5 = vcmp.eq.s32.totalorder %v973_v53, %v276_v54  ;;  %v283_v57 = vsel %vm279_vm4, %v237_v41, 0.0  ;;  %v615_v59 = vpop.eup %614  ;;  %v291_v61 = vrot.slane %v282_v56, 4 }
  0x4d   :  { %v284_v58 = vsel %vm280_vm5, %v238_v42, 0.0  ;;  %v342_v51 = vsub.f32 %v334_v32, %v338_v39  ;;  %vm423_vm15 = vcmp.eq.s32.totalorder %v973_v53, 0  ;;  %vm425_vm0 = vcmp.eq.s32.totalorder %v973_v53, 1 }
  0x4e   :  { %v538_v0 = vadd.f32 %v537_v60, %v536_v62  ;;  %v285_v60 = vrot.slane %v281_v55, 4  ;;  %v297_v62 = vrot.slane %v283_v57, 4  ;;  %vm428_vm1 = vcmp.eq.s32.totalorder %v973_v53, 2 }
  0x4f   :  { %vm554_vm2 = vcmp.eq.s32.totalorder %v973_v53, 3  ;;  %vm559_vm4 = vcmp.eq.s32.totalorder %v973_v53, 4 }
  0x50   :  { %v540_v2 = vadd.f32 %v539_v63, %v538_v0  ;;  %v303_v63 = vrot.slane %v284_v58, 4  ;;  %v617_v0 = vpop.eup %616  ;;  %v298_v9 = vadd.f32 %v297_v62, %v283_v57 }
  0x52   :  { %v542_v3 = vadd.f32 %v541_v1, %v540_v2  ;;  %v247_v1 = vrot.slane %v615_v59, 4  ;;  %v619_v2 = vpop.eup %618  ;;  %v304_v10 = vadd.f32 %v303_v63, %v284_v58  ;;  %v344_v58 = vsub.f32 %v336_v44, %v340_v46 }
  0x53   :  { %v353_v63 = vmul.f32 0.5, %v341_v50 }
  0x54   :  { %543 = vadd.xlane.f32.xlu0 %v542_v3  ;;  %v253_v3 = vrot.slane %v617_v0, 4  ;;  %v305_v22 = vrot.slane %v304_v10, 2 }
  0x56   :  { %v254_v11 = vadd.f32 %v617_v0, %v253_v3  ;;  %v306_v36 = vadd.f32 %v305_v22, %v304_v10  ;;  %v354_v0 = vmul.f32 0.5, %v342_v51  ;;  %v380_v22 = vld [vmem:[#allocation10 + $0x10] sm:$0xff] }
  0x58   :  { %v255_v17 = vrot.slane %v254_v11, 2  ;;  %v307_v57 = vrot.slane %v306_v36, 1 }
  0x5a   :  { %v256_v23 = vadd.f32 %v255_v17, %v254_v11 }
  0x5c   :  { %v257_v29 = vrot.slane %v256_v23, 1 }
  0x5e   :  { %v258_v40 = vadd.f32 %v257_v29, %v256_v23  ;;  %v381_v23 = vld [vmem:[#allocation10 + $0x18] sm:$0xff]  ;;  %v382_v29 = vld [vmem:[#allocation11] sm:$0xff] }
  0x9e   :  { %v446_v4 = vpop.xlane.xlu0 %445 }
  0x9f   :  { %v447_v5 = vrot.slane %v446_v4, 4 }
  0xa1   :  { %v448_v6 = vadd.f32 %v447_v5, %v446_v4  ;;  %v286_v4 = vadd.f32 %v285_v60, %v281_v55  ;;  %v292_v5 = vadd.f32 %v291_v61, %v282_v56  ;;  %v343_v55 = vsub.f32 %v335_v37, %v339_v45 }
  0xa2   :  { %v345_v60 = vand.u32 2147483647, %v341_v50  ;;  %v346_v61 = vand.u32 2147483647, %v342_v51 }
  0xa3   :  { %v449_v7 = vrot.slane %v448_v6, 2  ;;  %v287_v13 = vrot.slane %v286_v4, 2  ;;  %v293_v14 = vrot.slane %v292_v5, 2  ;;  %v355_v3 = vmul.f32 0.5, %v343_v55 }
  0xa4   :  { %vm979_vm6 = vcmp.lt.f32.partialorder %v345_v60, 1.0  ;;  %vm983_vm7 = vcmp.lt.f32.partialorder %v346_v61, 1.0 }
  0xa5   :  { %v450_v8 = vadd.f32 %v449_v7, %v448_v6  ;;  %v621_v6 = vpop.eup %620  ;;  %v248_v7 = vadd.f32 %v615_v59, %v247_v1  ;;  %v288_v25 = vadd.f32 %v287_v13, %v286_v4  ;;  %v294_v26 = vadd.f32 %v293_v14, %v292_v5 }
  0xa6   :  { %v265_v12 = vrot.slane %v621_v6, 4  ;;  %v356_v4 = vmul.f32 0.5, %v344_v58 }
  0xa7   :  { %v451_v16 = vrot.slane %v450_v8, 1  ;;  %v249_v15 = vrot.slane %v248_v7, 2  ;;  %v289_v42 = vrot.slane %v288_v25, 1  ;;  %v295_v43 = vrot.slane %v294_v26, 1 }
  0xa8   :  { %v266_v18 = vadd.f32 %v621_v6, %v265_v12 }
  0xa9   :  { %v452_v21 = vadd.f32 %v451_v16, %v450_v8  ;;  %v259_v8 = vrot.slane %v619_v2, 4  ;;  %v250_v19 = vadd.f32 %v249_v15, %v248_v7  ;;  %v290_v62 = vadd.f32 %v289_v42, %v288_v25  ;;  %v378_v15 = vld [vmem:[#allocation10] sm:$0xff] }
  0xaa   :  { %v267_v24 = vrot.slane %v266_v18, 2  ;;  %v308_v7 = vadd.f32 %v307_v57, %v306_v36  ;;  %v385_v36 = vld [vmem:[#allocation11 + $0x18] sm:$0xff]  ;;  %v386_v44 = vsub.f32 %v378_v15, %v382_v29 }
  0xab   :  { %596 = vpush %v452_v21  ;;  %v260_v16 = vadd.f32 %v619_v2, %v259_v8  ;;  %v299_v21 = vrot.slane %v298_v9, 2  ;;  %v251_v27 = vrot.slane %v250_v19, 1  ;;  %v296_v2 = vadd.f32 %v295_v43, %v294_v26 }
  0xac   :  { %v268_v30 = vadd.f32 %v267_v24, %v266_v18  ;;  %v347_v8 = vand.u32 2147483647, %v343_v55  ;;  %v357_v18 = vmul.f32 %v353_v63, %v341_v50 }
  0xad   :  { %v261_v20 = vrot.slane %v260_v16, 2  ;;  %v252_v33 = vadd.f32 %v251_v27, %v250_v19  ;;  %v300_v35 = vadd.f32 %v299_v21, %v298_v9  ;;  %v348_v9 = vand.u32 2147483647, %v344_v58  ;;  %v379_v21 = vld [vmem:[#allocation10 + $0x8] sm:$0xff] }
  0xae   :  { %v269_v41 = vrot.slane %v268_v30, 1  ;;  %v358_v19 = vmul.f32 %v354_v0, %v342_v51  ;;  %v359_v27 = vmul.f32 %v355_v3, %v343_v55  ;;  %vm987_vm8 = vcmp.lt.f32.partialorder %v347_v8, 1.0 }
  0xaf   :  { %v262_v28 = vadd.f32 %v261_v20, %v260_v16  ;;  %622 = vlog2.f32 %v252_v33  ;;  %v301_v56 = vrot.slane %v300_v35, 1  ;;  %v588_v20 = vadd.f32 -0.5, %v345_v60 }
  0xb0   :  { %v270_v54 = vadd.f32 %v269_v41, %v268_v30  ;;  %624 = vlog2.f32 %v258_v40  ;;  %v383_v30 = vld [vmem:[#allocation11 + $0x8] sm:$0xff]  ;;  %v589_v33 = vadd.f32 -0.5, %v346_v61  ;;  %vm991_vm9 = vcmp.lt.f32.partialorder %v348_v9, 1.0 }
  0xb1   :  { %v263_v34 = vrot.slane %v262_v28, 1  ;;  %v302_v6 = vadd.f32 %v301_v56, %v300_v35  ;;  %v591_v35 = vadd.f32 -0.5, %v348_v9  ;;  %v365_v43 = vsel %vm979_vm6, %v357_v18, %v588_v20 }
  0xb2   :  { %v387_v46 = vsub.f32 %v379_v21, %v383_v30  ;;  %v366_v50 = vsel %vm983_vm7, %v358_v19, %v589_v33 }
  0xb3   :  { %v264_v48 = vadd.f32 %v263_v34, %v262_v28  ;;  %v360_v28 = vmul.f32 %v356_v4, %v344_v58  ;;  %v590_v34 = vadd.f32 -0.5, %v347_v8  ;;  %v398_v58 = vmul.f32 0.5, %v386_v44 }
  0xb4   :  { %v391_v55 = vand.u32 2147483647, %v387_v46  ;;  %v369_v60 = vadd.f32 %v366_v50, %v365_v43  ;;  %v399_v0 = vmul.f32 0.5, %v387_v46  ;;  %v553_v43 = vand.u32 127, %v271_v49 }
  0xb5   :  { %626 = vlog2.f32 %v264_v48  ;;  %v623_v5 = vpop.eup %622  ;;  %v389_v48 = vsub.f32 %v381_v23, %v385_v36  ;;  %v367_v51 = vsel %vm987_vm8, %v359_v27, %v590_v34  ;;  %v402_v4 = vmul.f32 %v398_v58, %v386_v44 }
  0xb6   :  { %628 = vlog2.f32 %v270_v54  ;;  %v625_v10 = vpop.eup %624  ;;  %v310_v12 = vmul.f32 0.6931472, %v623_v5  ;;  %v390_v54 = vand.u32 2147483647, %v386_v44  ;;  %vm1007_vm12 = vcmp.lt.f32.partialorder %v391_v55, 1.0 }
  0xb7   :  { %v312_v17 = vmul.f32 0.6931472, %v625_v10  ;;  %v403_v8 = vmul.f32 %v399_v0, %v387_v46  ;;  %vm555_vm3 = vcmp.eq.s32.totalorder %v553_v43, 0 }
  0xb8   :  { %v317_v38 = vsub.f32 %v310_v12, %v290_v62  ;;  %v393_v62 = vand.u32 2147483647, %v389_v48  ;;  %vm1003_vm11 = vcmp.lt.f32.partialorder %v390_v54, 1.0  ;;  %v592_v5 = vadd.f32 -0.5, %v390_v54  ;;  %vm556_vm5 = vmand %vm554_vm2, %vm555_vm3 }
  0xb9   :  { %v318_v41 = vsub.f32 %v312_v17, %v296_v2  ;;  %v401_v2 = vmul.f32 0.5, %v389_v48  ;;  %vm560_vm6 = vmand %vm559_vm4, %vm555_vm3 }
  0xba   :  { %vm397_vm14 = vcmp.lt.f32.partialorder %v393_v62, 1.0  ;;  %v595_v13 = vadd.f32 -0.5, %v393_v62  ;;  %v410_v14 = vsel %vm1003_vm11, %v402_v4, %v592_v5 }
  0xbb   :  { %v627_v16 = vpop.eup %626  ;;  %v321_v56 = vadd.f32 %v318_v41, %v317_v38 }
  0xbc   :  { %v629_v24 = vpop.eup %628  ;;  %v314_v26 = vmul.f32 0.6931472, %v627_v16 }
  0xbd   :  { %v316_v32 = vmul.f32 0.6931472, %v629_v24 }
  0xbe   :  { %v319_v42 = vsub.f32 %v314_v26, %v302_v6  ;;  %v593_v6 = vadd.f32 -0.5, %v391_v55 }
  0xbf   :  { %v320_v45 = vsub.f32 %v316_v32, %v308_v7  ;;  %v324_v7 = vsel %vm323_vm10, %v321_v56, 0.0 }
  0xc0   :  { %v411_v15 = vsel %vm1007_vm12, %v403_v8, %v593_v6 }
  0xc1   :  { %v414_v20 = vadd.f32 %v411_v15, %v410_v14 }
  0xc7   :  { %v544_v47 = vpop.xlane.xlu0 %543 }
  0xc8   :  { %v545_v52 = vrot.slane %v544_v47, 4 }
  0xca   :  { %v546_v59 = vadd.f32 %v545_v52, %v544_v47  ;;  %v388_v47 = vsub.f32 %v380_v22, %v384_v31  ;;  %v368_v52 = vsel %vm991_vm9, %v360_v28, %v591_v35 }
  0xcb   :  { %v370_v61 = vadd.f32 %v368_v52, %v367_v51 }
  0xcc   :  { %v547_v1 = vrot.slane %v546_v59, 2  ;;  %v392_v57 = vand.u32 2147483647, %v388_v47 }
  0xcd   :  { %v371_v18 = vadd.f32 %v370_v61, %v369_v60 }
  0xce   :  { %v548_v11 = vadd.f32 %v547_v1, %v546_v59  ;;  %v322_v59 = vadd.f32 %v320_v45, %v319_v42  ;;  %v400_v1 = vmul.f32 0.5, %v388_v47  ;;  %vm396_vm13 = vcmp.lt.f32.partialorder %v392_v57, 1.0 }
  0xcf   :  { %v594_v12 = vadd.f32 -0.5, %v392_v57  ;;  %v372_v23 = vrot.slane %v371_v18, 4 }
  0xd0   :  { %v549_v25 = vrot.slane %v548_v11, 1  ;;  %v404_v9 = vmul.f32 %v400_v1, %v388_v47  ;;  %v325_v10 = vsel %vm323_vm10, %v322_v59, 0.0 }
  0xd1   :  { %v326_v17 = vadd.f32 %v325_v10, %v324_v7  ;;  %v373_v26 = vadd.f32 %v372_v23, %v371_v18 }
  0xd2   :  { %v550_v37 = vadd.f32 %v549_v25, %v548_v11  ;;  %v405_v11 = vmul.f32 %v401_v2, %v389_v48  ;;  %v412_v16 = vsel %vm396_vm13, %v404_v9, %v594_v12 }
  0xd3   :  { %v327_v22 = vrot.slane %v326_v17, 4  ;;  %v374_v29 = vrot.slane %v373_v26, 2 }
  0xd4   :  { %598 = vpush %v550_v37  ;;  %v413_v19 = vsel %vm397_vm14, %v405_v11, %v595_v13 }
  0xd5   :  { %v415_v21 = vadd.f32 %v413_v19, %v412_v16  ;;  %v328_v25 = vadd.f32 %v327_v22, %v326_v17  ;;  %v375_v32 = vadd.f32 %v374_v29, %v373_v26 }
  0xd7   :  { %v416_v24 = vadd.f32 %v415_v21, %v414_v20  ;;  %v329_v28 = vrot.slane %v328_v25, 2  ;;  %v376_v35 = vrot.slane %v375_v32, 1 }
  0xd9   :  { %v417_v27 = vrot.slane %v416_v24, 4  ;;  %v330_v31 = vadd.f32 %v329_v28, %v328_v25  ;;  %v377_v38 = vadd.f32 %v376_v35, %v375_v32 }
  0xdb   :  { %v418_v30 = vadd.f32 %v417_v27, %v416_v24  ;;  %v331_v34 = vrot.slane %v330_v31, 1  ;;  %v426_v42 = vsel %vm425_vm0, %v377_v38, 0.0 }
  0xdc   :  { %s597_s6 = spop %596 }
  0xdd   :  { %v419_v33 = vrot.slane %v418_v30, 2  ;;  %v332_v37 = vadd.f32 %v331_v34, %v330_v31  ;;  %v557_v47 = vstv %s597_s6 }
  0xde   :  { %v558_v50 = vsel %vm556_vm5, %v557_v47, 0.0 }
  0xdf   :  { %v420_v36 = vadd.f32 %v419_v33, %v418_v30  ;;  %v424_v41 = vsel %vm423_vm15, %v332_v37, 0.0 }
  0xe0   :  { %v427_v44 = vadd.f32 %v426_v42, %v424_v41 }
  0xe1   :  { %v421_v39 = vrot.slane %v420_v36, 1 }
  0xe3   :  { %v422_v40 = vadd.f32 %v421_v39, %v420_v36 }
  0xe5   :  { %v429_v45 = vsel %vm428_vm1, %v422_v40, 0.0 }
  0xe6   :  { %v430_v46 = vadd.f32 %v429_v45, %v427_v44 }
 0x105   :  { %s599_s7 = spop %598 }
 0x106   :  { %v561_v48 = vstv %s599_s7 }
 0x107   :  { %v562_v51 = vsel %vm560_vm6, %v561_v48, 0.0 }
 0x108   :  { %v563_v49 = vadd.f32 %v562_v51, %v558_v50 }
 0x10a   :  { %v565_v52 = vadd.f32 %v563_v49, %v430_v46 }
 0x10c   :  { %566 = vst [vmem:[#allocation16] sm:$0xff] %v565_v52 }
 0x10d   :  { %577 = dma.vmem_to_hbm [thread:$0]  %s573_s13, 128, %s575_s15, [#allocation4]  }
 0x10e   :  { %856 = dma.done.wait [#allocation4], 128  }
 0x10f   :  { %857 = vsyncadd [#allocation4], 4294967168 }
 0x110   :  { %582 = vsyncpa [#allocation3], 1 }
 0x111   :  { %583 = vsyncpa [#allocation6], 1 }
 0x112   :  { %584 = vsyncpa [#allocation9], 1 }
 0x113   :  { %585 = vsyncpa [#allocation12], 1 }
 0x114   :  { %586 = vsyncpa [#allocation15], 1 }
 0x115   :  { %587 = vsyncpa [#allocation4], 1 }

</bundles_post_ra>
